<compile_context>
chip_gen: v7x
topology: tpu7x:2x2x1
jax: 0.10.0
libtpu: 0.0.40
codegen_flags: <defaults>
</compile_context>

<pallas_src>
import jax
import jax.numpy as jnp
from jax.experimental import pallas as pl
from jax.experimental.pallas import tpu as pltpu

_LANES = 128


def _round_up(x, m):
    return (x + m - 1) // m * m


def _policy_kernel(x_ref, w1_ref, b1_ref, w2_ref, b2_ref, out_ref):
    # ---- fc + ReLU: in-kernel bf16 cast (VPU), MXU matmul, f32 accumulate ----
    x = x_ref[...].astype(jnp.bfloat16)                       # (TB, I) bf16
    h = jnp.dot(x, w1_ref[...],
                preferred_element_type=jnp.float32)           # (TB, H) f32
    h = jnp.maximum(h + b1_ref[...], 0.0)

    # ---- fc_action into padded 128-lane logits (lane-dense) ----
    logits = jnp.dot(h.astype(jnp.bfloat16), w2_ref[...],
                     preferred_element_type=jnp.float32)      # (TB, OP) f32
    # Pad lanes carry a -1e30 bias (kept in f32 -> exp underflows to exactly 0;
    # do NOT move this bias to bf16, -inf pad lanes would risk NaN).
    logits = logits + b2_ref[...]

    # ---- numerically stable softmax over the lane-dense last dim ----
    m = jnp.max(logits, axis=-1, keepdims=True)
    e = jnp.exp(logits - m)
    denom = jnp.sum(e, axis=-1, keepdims=True)
    r = pl.reciprocal(denom, approx=True)       # EUP vrcp (otherwise-idle slot)
    r = r * (2.0 - denom * r)                   # one Newton step -> ~f32 exact
    out_ref[...] = (e * r).astype(out_ref.dtype)


def prepare_policy_params(w1, b1, w2, b2):
    """One-time weight preparation (bf16 cast + lane padding).

    Hoisted out of the per-call path: in an RL loop the policy weights do not
    change between forward calls, so pad/cast once and reuse.
    """
    I, H = w1.shape
    O = w2.shape[1]
    OP = _round_up(max(O, _LANES), _LANES)
    w1_bf = w1.astype(jnp.bfloat16)                                    # (I, H)
    b1_2d = b1.reshape(1, H).astype(jnp.float32)                       # (1, H)
    w2_bf = jnp.pad(w2.astype(jnp.float32),
                    ((0, 0), (0, OP - O))).astype(jnp.bfloat16)        # (H, OP)
    b2_2d = jnp.pad(b2.reshape(1, O).astype(jnp.float32),
                    ((0, 0), (0, OP - O)), constant_values=-1e30)      # (1, OP) f32
    return {"w1": w1_bf, "b1": b1_2d, "w2": w2_bf, "b2": b2_2d, "n_actions": O}


def _pick_tile(batch):
    if batch <= 512:
        # Single grid step for small batches (per-step overhead dominates).
        return _round_up(batch, 16)
    # Large batches: keep >=2 blocks so v7x's second TensorCore gets work,
    # cap at 1024 rows (double-buffered working set stays ~1 MiB).
    return min(1024, _round_up(pl.cdiv(batch, 2), 16))


def policy_forward(state, params, *, tb=None, out_dtype=jnp.bfloat16):
    """state: (B, I) f32; params: output of prepare_policy_params."""
    B, I = state.shape
    H = params["w1"].shape[1]
    OP = params["w2"].shape[1]
    O = params["n_actions"]

    if tb is None:
        tb = _pick_tile(B)
    tb = _round_up(tb, 16)
    b_pad = _round_up(B, tb)
    n_blocks = b_pad // tb

    x = state.astype(jnp.float32)          # stays f32; bf16 cast happens in-kernel
    if b_pad != B:
        x = jnp.pad(x, ((0, b_pad - B), (0, 0)))

    out_bytes = b_pad * OP * jnp.dtype(out_dtype).itemsize
    cost = pl.CostEstimate(
        flops=2 * b_pad * (I * H + H * OP),
        transcendentals=b_pad * (OP + 1),
        bytes_accessed=(b_pad * I * 4                     # streamed state
                        + I * H * 2 + H * 4               # fc weights / bias
                        + H * OP * 2 + OP * 4             # fc_action weights / bias
                        + out_bytes),                     # probabilities
    )

    out_pad = pl.pallas_call(
        _policy_kernel,
        out_shape=jax.ShapeDtypeStruct((b_pad, OP), out_dtype),
        grid=(n_blocks,),
        in_specs=[
            pl.BlockSpec((tb, I), lambda i: (i, 0)),     # streamed f32 state
            pl.BlockSpec((I, H), lambda i: (0, 0)),      # resident weights
            pl.BlockSpec((1, H), lambda i: (0, 0)),
            pl.BlockSpec((H, OP), lambda i: (0, 0)),
            pl.BlockSpec((1, OP), lambda i: (0, 0)),
        ],
        out_specs=pl.BlockSpec((tb, OP), lambda i: (i, 0)),
        compiler_params=pltpu.CompilerParams(
            dimension_semantics=("parallel",),   # megacore / v7x 2nd TC
            vmem_limit_bytes=16 << 20),          # generous; WS < 2 MiB at tb=2048
        cost_estimate=cost,
    )(x, params["w1"], params["b1"], params["w2"], params["b2"])

    # For standalone use, return (B, O) f32 probabilities. Consumers embedded
    # in a larger jitted step should take `out_pad` (padded, bf16, lane-dense)
    # directly and fold this slice/cast into their own op.
    return out_pad[:B, :O].astype(jnp.float32)


def _ref_forward(state, w1, b1, w2, b2):
    h = jnp.maximum(state @ w1 + b1, 0.0)
    logits = h @ w2 + b2
    return jax.nn.softmax(logits, axis=-1)


if __name__ == "__main__":
    INPUT_SIZE = 32     # input_size
    HIDDEN = 128        # fixed by the module
    OUTPUT_SIZE = 8     # output_size
    BATCH = 20          # small batch; tb=16 exercises grid=(2,) + row padding

    key = jax.random.PRNGKey(0)
    k_x, k_w1, k_b1, k_w2, k_b2 = jax.random.split(key, 5)

    # Deterministic init mimicking nn.Linear's uniform(-1/sqrt(fan_in), 1/sqrt(fan_in))
    lim1 = 1.0 / jnp.sqrt(INPUT_SIZE)
    lim2 = 1.0 / jnp.sqrt(HIDDEN)
    w1 = jax.random.uniform(k_w1, (INPUT_SIZE, HIDDEN), jnp.float32, -lim1, lim1)
    b1 = jax.random.uniform(k_b1, (HIDDEN,), jnp.float32, -lim1, lim1)
    w2 = jax.random.uniform(k_w2, (HIDDEN, OUTPUT_SIZE), jnp.float32, -lim2, lim2)
    b2 = jax.random.uniform(k_b2, (OUTPUT_SIZE,), jnp.float32, -lim2, lim2)

    state = jax.random.normal(k_x, (BATCH, INPUT_SIZE), jnp.float32)

    # One-time weight preparation (hoisted out of the per-call path).
    params = prepare_policy_params(w1, b1, w2, b2)

    probs = policy_forward(state, params, tb=16)
    probs = jax.block_until_ready(probs)

    # Sanity check vs pure-JAX f32 reference (bf16 MXU inputs + bf16 output
    # quantization -> ~1e-2 tolerance).
    ref = _ref_forward(state, w1, b1, w2, b2)
    assert probs.shape == (BATCH, OUTPUT_SIZE)
    assert jnp.allclose(probs, ref, atol=2e-2, rtol=2e-2)
    assert jnp.allclose(jnp.sum(probs, axis=-1), 1.0, atol=2e-2)
    assert jnp.all(jnp.argmax(probs, axis=-1) == jnp.argmax(ref, axis=-1))

    print("KERNEL_OK")
</pallas_src>

<mosaic_0001>
module attributes {stable_mosaic.version = 11 : i64} {
  func.func @_policy_kernel(%arg0: i32, %arg1: memref<16x32xf32, #tpu.memory_space<vmem>>, %arg2: memref<32x128xbf16, #tpu.memory_space<vmem>>, %arg3: memref<1x128xf32, #tpu.memory_space<vmem>>, %arg4: memref<128x128xbf16, #tpu.memory_space<vmem>>, %arg5: memref<1x128xf32, #tpu.memory_space<vmem>>, %arg6: memref<16x128xbf16, #tpu.memory_space<vmem>>) attributes {dimension_semantics = [#tpu.dimension_semantics<parallel>], iteration_bounds = array<i64: 2>, scalar_prefetch = 0 : i64, scratch_operands = 0 : i64, tpu.core_type = #tpu.core_type<tc>, window_params = [{transform_indices = @transform_0, window_bounds = array<i64: 16, 32>}, {pipeline_mode = #tpu.pipeline_mode<synchronous>, transform_indices = @transform_1, window_bounds = array<i64: 32, 128>}, {pipeline_mode = #tpu.pipeline_mode<synchronous>, transform_indices = @transform_2, window_bounds = array<i64: 1, 128>}, {pipeline_mode = #tpu.pipeline_mode<synchronous>, transform_indices = @transform_3, window_bounds = array<i64: 128, 128>}, {pipeline_mode = #tpu.pipeline_mode<synchronous>, transform_indices = @transform_4, window_bounds = array<i64: 1, 128>}, {transform_indices = @transform_5, window_bounds = array<i64: 16, 128>}]} {
    %c0 = arith.constant 0 : index
    %c0_0 = arith.constant 0 : index
    %0 = vector.load %arg1[%c0, %c0_0] : memref<16x32xf32, #tpu.memory_space<vmem>>, vector<16x32xf32>
    %1 = arith.truncf %0 : vector<16x32xf32> to vector<16x32xbf16>
    %c0_1 = arith.constant 0 : index
    %c0_2 = arith.constant 0 : index
    %2 = vector.load %arg2[%c0_1, %c0_2] : memref<32x128xbf16, #tpu.memory_space<vmem>>, vector<32x128xbf16>
    %cst = arith.constant dense<0.000000e+00> : vector<16x128xf32>
    %3 = tpu.matmul %1, %2, %cst {dimension_numbers = #tpu.dot_dimension_numbers<[1], [0], [0], [1], [0, 0, 1, 1], [], []>} : vector<16x32xbf16>, vector<32x128xbf16>, vector<16x128xf32> -> vector<16x128xf32>
    %c0_3 = arith.constant 0 : index
    %c0_4 = arith.constant 0 : index
    %4 = vector.load %arg3[%c0_3, %c0_4] : memref<1x128xf32, #tpu.memory_space<vmem>>, vector<1x128xf32>
    %5 = vector.broadcast %4 : vector<1x128xf32> to vector<16x128xf32>
    %6 = arith.addf %3, %5 : vector<16x128xf32>
    %cst_5 = arith.constant 0.000000e+00 : f32
    %7 = vector.broadcast %cst_5 : f32 to vector<16x128xf32>
    %8 = arith.maximumf %6, %7 : vector<16x128xf32>
    %9 = arith.truncf %8 : vector<16x128xf32> to vector<16x128xbf16>
    %c0_6 = arith.constant 0 : index
    %c0_7 = arith.constant 0 : index
    %10 = vector.load %arg4[%c0_6, %c0_7] : memref<128x128xbf16, #tpu.memory_space<vmem>>, vector<128x128xbf16>
    %cst_8 = arith.constant dense<0.000000e+00> : vector<16x128xf32>
    %11 = tpu.matmul %9, %10, %cst_8 {dimension_numbers = #tpu.dot_dimension_numbers<[1], [0], [0], [1], [0, 0, 1, 1], [], []>} : vector<16x128xbf16>, vector<128x128xbf16>, vector<16x128xf32> -> vector<16x128xf32>
    %c0_9 = arith.constant 0 : index
    %c0_10 = arith.constant 0 : index
    %12 = vector.load %arg5[%c0_9, %c0_10] : memref<1x128xf32, #tpu.memory_space<vmem>>, vector<1x128xf32>
    %13 = vector.broadcast %12 : vector<1x128xf32> to vector<16x128xf32>
    %14 = arith.addf %11, %13 : vector<16x128xf32>
    %cst_11 = arith.constant dense<0xFF800000> : vector<16xf32>
    %15 = vector.multi_reduction <maximumf>, %14, %cst_11 [1] : vector<16x128xf32> to vector<16xf32>
    %16 = vector.shape_cast %15 : vector<16xf32> to vector<16x1xf32>
    %17 = vector.broadcast %16 : vector<16x1xf32> to vector<16x128xf32>
    %18 = arith.subf %14, %17 : vector<16x128xf32>
    %19 = math.exp %18 : vector<16x128xf32>
    %cst_12 = arith.constant dense<0.000000e+00> : vector<16xf32>
    %20 = vector.multi_reduction <add>, %19, %cst_12 [1] : vector<16x128xf32> to vector<16xf32>
    %21 = vector.shape_cast %20 : vector<16xf32> to vector<16x1xf32>
    %22 = tpu.reciprocal %21 {approx = true} : vector<16x1xf32> -> vector<16x1xf32>
    %23 = arith.mulf %21, %22 : vector<16x1xf32>
    %cst_13 = arith.constant 2.000000e+00 : f32
    %24 = vector.broadcast %cst_13 : f32 to vector<16x1xf32>
    %25 = arith.subf %24, %23 : vector<16x1xf32>
    %26 = arith.mulf %22, %25 : vector<16x1xf32>
    %27 = vector.broadcast %26 : vector<16x1xf32> to vector<16x128xf32>
    %28 = arith.mulf %19, %27 : vector<16x128xf32>
    %29 = arith.truncf %28 : vector<16x128xf32> to vector<16x128xbf16>
    %c0_14 = arith.constant 0 : index
    %c0_15 = arith.constant 0 : index
    %30 = vector.load %arg6[%c0_14, %c0_15] : memref<16x128xbf16, #tpu.memory_space<vmem>>, vector<16x128xbf16>
    tpu.vector_store %arg6[%c0_14, %c0_15], %29 {strides = array<i32>} : memref<16x128xbf16, #tpu.memory_space<vmem>>, vector<16x128xbf16>,
    return
  }
  func.func @transform_0(%arg0: i32) -> (i32, i32) {
    %c0_i32 = arith.constant 0 : i32
    %c0_i32_0 = arith.constant 0 : i32
    return %arg0, %c0_i32 : i32, i32
  }
  func.func @transform_1(%arg0: i32) -> (i32, i32) {
    %c0_i32 = arith.constant 0 : i32
    %c0_i32_0 = arith.constant 0 : i32
    %c0_i32_1 = arith.constant 0 : i32
    return %c0_i32, %c0_i32_0 : i32, i32
  }
  func.func @transform_2(%arg0: i32) -> (i32, i32) {
    %c0_i32 = arith.constant 0 : i32
    %c0_i32_0 = arith.constant 0 : i32
    %c0_i32_1 = arith.constant 0 : i32
    return %c0_i32, %c0_i32_0 : i32, i32
  }
  func.func @transform_3(%arg0: i32) -> (i32, i32) {
    %c0_i32 = arith.constant 0 : i32
    %c0_i32_0 = arith.constant 0 : i32
    %c0_i32_1 = arith.constant 0 : i32
    return %c0_i32, %c0_i32_0 : i32, i32
  }
  func.func @transform_4(%arg0: i32) -> (i32, i32) {
    %c0_i32 = arith.constant 0 : i32
    %c0_i32_0 = arith.constant 0 : i32
    %c0_i32_1 = arith.constant 0 : i32
    return %c0_i32, %c0_i32_0 : i32, i32
  }
  func.func @transform_5(%arg0: i32) -> (i32, i32) {
    %c0_i32 = arith.constant 0 : i32
    %c0_i32_0 = arith.constant 0 : i32
    return %arg0, %c0_i32 : i32, i32
  }
}

</mosaic_0001>

<bundles_post_ra>
// kernel: tpu_custom_call.1
= control target key start
LH: loop header
LB: loop body
LE: loop exit
PB: predicated region body
PF: predicated region fallthrough
CT: control target
= control target key end

     0   :  { %10 = vsyncpa [#allocation3], 0  ;;  %s1217_s0 = inlined_call_operand.hbm [shape: f32[32,32], index: 0, kind: input, shape index: {}]   ;;  %s1218_s1 = inlined_call_operand.hbm [shape: bf16[32,128], index: 1, kind: input, shape index: {}]   ;;  %s1219_s2 = inlined_call_operand.vmem [shape: f32[1,128], index: 2, kind: input, shape index: {}]   ;;  %s1220_s3 = inlined_call_operand.hbm [shape: bf16[128,128], index: 3, kind: input, shape index: {}]   ;;  %s1221_s4 = inlined_call_operand.vmem [shape: f32[1,128], index: 4, kind: input, shape index: {}]   ;;  %s1222_s5 = inlined_call_operand.hbm [shape: bf16[32,128], index: 5, kind: output, shape index: {}]  }
   0x1   :  { %12 = vsyncpa [#allocation3 + $0x1], 0 }
   0x2   :  { %13 = vsyncpa [#allocation6], 0 }
   0x3   :  { %14 = vsyncpa [#allocation4], 0 }
   0x4   :  { %16 = vsyncpa [#allocation4 + $0x1], 0  ;;  %s976_s18 = smov 0   ;;  %s978_s19 = smov 0  }
   0x5   :  { %s980_s20 = smov 0   ;;  %s982_s21 = smov 0  }
   0x6 LB: > { %s997_s22 = sadd.s32 4294967295, %s932_s21   ;;  %s601_s23 = sadd.s32 4294967294, %s932_s21   ;;  %s932_s21 = sphi %s982_s21, %s1242_s21   ;;  %s928_s20 = sphi %s980_s20, %s1241_s20   ;;  %s924_s19 = sphi %s978_s19, %s1240_s19   ;;  %s920_s18 = sphi %s976_s18, %s1239_s18  }
   0x7   : > { %p42_p0 = scmp.ne.s32.totalorder %s924_s19, %s920_s18  ;;  %p1223_p1 = scmp.eq.s32.totalorder %s997_s22, 0 }
   0x8   : > { %p156_p3 = scmp.eq.s32.totalorder %s601_s23, 1  ;;  %p602_p5 = scmp.ge.s32.totalorder %s932_s21, 1 }
   0x9   : > { %p1006_p4 = por %p1223_p1, %p42_p0  ;;  %p163_p7 = scmp.lt.s32.totalorder %s932_s21, 3 }
   0xa   : > { %p1011_p6 = por %p156_p3, %p42_p0  ;;  %s934_s27 = smov [#allocation5]  }
   0xb   : > { %s1226_s24 = scalar_select %p1006_p4, 1, 0 }
   0xc   : > { %s1227_s25 = scalar_select %p1011_p6, 1, 0 }
   0xd   : > { %p1016_p8 = pnand %p602_p5, %p163_p7  ;;  %s175_s28 = sshll.u32 %s934_s27, 4  ;;  %s1020_s28 = int_to_ptr.vmem [resolvable:$true] %s175_s28 }
   0xe   : > { %s935_s30 = smov [#allocation7]   ;;  %s776_s9 = scalar_lea.hbm %s1218_s1, 256 }
   0xf   : > { %p695_p9 = pneg %p1016_p8  ;;  %s191_s6 = sshll.u32 %s935_s30, 4  ;;  %s1031_s6 = int_to_ptr.vmem [resolvable:$true] %s191_s6 }
  0x10   : > { %p777_p12 = scmp.ne.s32.totalorder %s1218_s1, %s776_s9  ;;  %p783_p5 = scmp.lt.u32.totalorder %s776_s9, %s1218_s1 }
  0x11   : > { %p1027_p11 = pnand %p695_p9, %p1223_p1 }
  0x13   : > { %p778_p13 = pneg %p1027_p11 }
  0x15   : > { %p779_p0 = pnand %p778_p13, %p777_p12 }
  0x17   : > { %p780_p3 = pneg %p779_p0 }
  0x19   : > { %p785_p7 = pnand %p783_p5, %p780_p3 }
  0x1b   : > { %788 = shalt.err (!%p785_p7)
}
  0x1c   : > { %s789_s14 = scalar_lea.vmem %s1020_s28, 256  ;;  %p797_p2 = scmp.lt.s32.totalorder %s1020_s28, %s1020_s28 }
  0x1d   : > { %p790_p9 = scmp.ne.s32.totalorder %s1020_s28, %s789_s14  ;;  %p798_p12 = scmp.lt.s32.totalorder %s789_s14, %s789_s14 }
  0x1f   : > { %p792_p10 = pnand %p790_p9, %p778_p13  ;;  %p799_p0 = por %p798_p12, %p797_p2 }
  0x21   : > { %p793_p1 = pneg %p792_p10 }
  0x23   : > { %p800_p6 = pnand %p799_p0, %p793_p1 }
  0x25   : > { %803 = shalt.err (!%p800_p6)
}
  0x26   : > { %s936_s15 = smov 64   ;;  %s937_s16 = smov 4  }
  0x27   : > { %698 = dma.hbm_to_vmem [thread:$0]  (!%p1027_p11), %s1218_s1, 256, %s1020_s28, [#allocation6], %s936_s15, %s936_s15, %s937_s16  }
  0x28   : > { %s804_s7 = scalar_lea.hbm %s1220_s3, 1024 }
  0x29   : > { %p805_p2 = scmp.ne.s32.totalorder %s1220_s3, %s804_s7  ;;  %p811_p10 = scmp.lt.u32.totalorder %s804_s7, %s1220_s3 }
  0x2b   : > { %p807_p1 = pnand %p805_p2, %p778_p13 }
  0x2d   : > { %p808_p6 = pneg %p807_p1 }
  0x2f   : > { %p813_p3 = pnand %p811_p10, %p808_p6 }
  0x31   : > { %816 = shalt.err (!%p813_p3)
}
  0x32   : > { %s817_s28 = scalar_lea.vmem %s1031_s6, 1024  ;;  %p825_p12 = scmp.lt.s32.totalorder %s1031_s6, %s1031_s6 }
  0x33   : > { %p818_p5 = scmp.ne.s32.totalorder %s1031_s6, %s817_s28  ;;  %p826_p0 = scmp.lt.s32.totalorder %s817_s28, %s817_s28 }
  0x35   : > { %p820_p7 = pnand %p818_p5, %p778_p13  ;;  %p827_p2 = por %p826_p0, %p825_p12 }
  0x37   : > { %p821_p9 = pneg %p820_p7 }
  0x39   : > { %p828_p1 = pnand %p827_p2, %p821_p9 }
  0x3b   : > { %831 = shalt.err (!%p828_p1)
}
  0x3c   : > { %701 = dma.hbm_to_vmem [thread:$0]  (!%p1027_p11), %s1220_s3, 1024, %s1031_s6, [#allocation6], %s936_s15, %s936_s15, %s937_s16  }
  0x3d   : > { %s1086_s14 = sadd.s32 1, %s932_s21   ;;  %s29_s29 = sadd.s32 1, %s928_s20 }
  0x3e   : > { %s26_s17 = ssub.s32 %s932_s21, %s1086_s14  ;;  %p36_p13 = scmp.ne.s32.totalorder %s928_s20, %s924_s19 }
  0x3f   : > { %p27_p6 = scmp.eq.s32.totalorder %s26_s17, 0  ;;  %p37_p10 = scmp.eq.s32.totalorder %s932_s21, 0 }
  0x40   : > { %p1230_p3 = scmp.eq.s32.totalorder %s997_s22, 1  ;;  %p712_p7 = scmp.lt.s32.totalorder %s932_s21, 2 }
  0x41   : > { %s1102_s27 = scalar_select %p27_p6, %s928_s20, %s29_s29  }
  0x42   : > { %p1096_p5 = por %p1230_p3, %p36_p13  ;;  %p38_p9 = por %p37_p10, %p36_p13 }
  0x43   : > { %s208_s30 = sand.u32 1, %s928_s20   ;;  %s634_s6 = sshll.u32 %s932_s21, 8 }
  0x44   : > { %s1231_s23 = scalar_select %p1096_p5, 1, 0 }
  0x45   : > { %s606_s7 = sshll.u32 %s208_s30, 4  ;;  %s1109_s8 = scalar_lea.hbm %s1217_s0, %s634_s6 }
  0x46   : > { %s212_s9 = scalar_lea.vmem [#allocation2], %s606_s7  ;;  %p1113_p11 = pnand %p712_p7, %p38_p9 }
  0x47   : > { %s219_s10 = sshll.u32 %s212_s9, 4  ;;  %s1117_s28 = scalar_lea.sflag [#allocation3], %s208_s30  ;;  %s1111_s10 = int_to_ptr.vmem [resolvable:$true] %s219_s10 }
  0x48   : > { %s832_s12 = scalar_lea.hbm %s1109_s8, 256  ;;  %p834_p0 = pneg %p1113_p11 }
  0x49   : > { %p833_p12 = scmp.ne.s32.totalorder %s1109_s8, %s832_s12  ;;  %s837_s17 = scalar_lea.hbm %s1217_s0, 512 }
  0x4a   : > { %p838_p13 = scmp.lt.u32.totalorder %s1109_s8, %s1217_s0  ;;  %p839_p6 = scmp.lt.u32.totalorder %s837_s17, %s832_s12 }
  0x4b   : > { %p835_p2 = pnand %p834_p0, %p833_p12  ;;  %p841_p3 = scmp.lt.u32.totalorder %s832_s12, %s1109_s8 }
  0x4c   : > { %p840_p10 = por %p839_p6, %p838_p13 }
  0x4d   : > { %p836_p1 = pneg %p835_p2 }
  0x4e   : > { %p842_p7 = por %p841_p3, %p840_p10 }
  0x50   : > { %p843_p9 = pnand %p842_p7, %p836_p1 }
  0x52   : > { %846 = shalt.err (!%p843_p9)
}
  0x53   : > { %s847_s30 = scalar_lea.vmem %s1111_s10, 256  ;;  %s938_s15 = smov [#allocation2]  }
  0x54   : > { %p848_p12 = scmp.ne.s32.totalorder %s1111_s10, %s847_s30  ;;  %s852_s16 = sshll.u32 %s938_s15, 4  ;;  %s853_s16 = int_to_ptr.vmem [resolvable:$false] %s852_s16 }
  0x55   : > { %s854_s9 = scalar_lea.vmem %s853_s16, 512  ;;  %p855_p4 = scmp.lt.s32.totalorder %s1111_s10, %s853_s16 }
  0x56   : > { %p850_p2 = pnand %p848_p12, %p834_p0  ;;  %p856_p13 = scmp.lt.s32.totalorder %s854_s9, %s847_s30 }
  0x58   : > { %p851_p5 = pneg %p850_p2  ;;  %p857_p6 = por %p856_p13, %p855_p4 }
  0x5a   : > { %p858_p10 = pnand %p857_p6, %p851_p5 }
  0x5c   : > { %861 = shalt.err (!%p858_p10)
}
  0x5d   : > { %s939_s12 = smov 128   ;;  %s940_s13 = smov 8  }
  0x5e   : > { %705 = dma.hbm_to_vmem [thread:$0]  (!%p1113_p11), %s1109_s8, 256, %s1111_s10, %s1117_s28, %s939_s12, %s939_s12, %s940_s13  }
  0x5f   : > { %231 = sbr.rel (%p1016_p8) target bundleno = 889 (0x379), region = 40  ;;  %s1148_s29 = sand.u32 (!%p1016_p8), 1, %s924_s19  }
  0x60   : > { %s610_s17 = sshll.u32 (!%p1016_p8), %s1148_s29, 4  ;;  %s234_s7 = scalar_lea.sflag (!%p1016_p8), [#allocation3], %s1148_s29 }
  0x61   : > { %s237_s6 = scalar_lea.vmem (!%p1016_p8), [#allocation2], %s610_s17  ;;  %p1233_p4 = scmp.ne.s32.totalorder (!%p1016_p8), %s1226_s24, 0 }
  0x66   : > { %907 = dma.done.wait (%p1233_p4), %s234_s7, 256  }
  0x67   : > { %909 = vsyncadd (%p1233_p4), %s234_s7, 4294967040  ;;  %p1234_p5 = scmp.eq.s32.totalorder %s997_s22, 0 }
  0x69   : > { %911 = dma.done.wait (%p1234_p5), [#allocation6], 1280   ;;  %p1235_p11 = pmov %p1234_p5 }
  0x6a   : > { %v941_v0 = vmov 0.0   ;;  %vm942_vm0 = vmmov 0   ;;  %v758_v1 = vld [vmem:[#allocation5] sm:$0xff]   ;;  %v759_v2 = vld [vmem:[#allocation5 + $0x8] sm:$0xff]   ;;  %v760_v5 = vld [vmem:[#allocation7] sm:$0xff]   ;;  %vm301_vm1 = vcmask 261120  }
  0x6b   : > { %913 = vsyncadd (%p1235_p11), [#allocation6], 4294966016  ;;  %655 = vmatprep.subr.bf16.mxu0 %v941_v0  ;;  %659 = vmatprep.mubr.msk.bf16.mxu0 %vm942_vm0, %v941_v0  ;;  %v275_v3 = vld [vmem:[%s237_s6] sm:$0xff]  ;;  %v276_v4 = vld [vmem:[%s237_s6 + $0x8] sm:$0xff]  ;;  %s613_s11 = sshll.u32 %s1148_s29, 3  ;;  %s637_s28 = sshll.u32 %s997_s22, 7 }
  0x6c   : > { %663 = vmatprep.subr.bf16.mxu1 %v941_v0  ;;  %679 = vmatprep.mubr.msk.bf16.mxu1 %vm942_vm0, %v941_v0  ;;  %v277_v6 = vpack.c.bf16 %v276_v4, %v275_v3  ;;  %v761_v7 = vld [vmem:[#allocation7 + $0x8] sm:$0xff]   ;;  %v762_v8 = vld [vmem:[#allocation7 + $0x10] sm:$0xff]   ;;  %v763_v9 = vld [vmem:[#allocation7 + $0x18] sm:$0xff]   ;;  %s271_s30 = scalar_lea.vmem [#allocation8], %s613_s11  ;;  %s1171_s12 = scalar_lea.hbm %s1222_s5, %s637_s28 }
  0x6d   : > { %656 = vmatpush3.bf16.msra.mxu0 %v758_v1  ;;  %664 = vmatpush3.bf16.msra.mxu1 %v760_v5  ;;  %v764_v10 = vld [vmem:[#allocation7 + $0x20] sm:$0xff]   ;;  %v765_v11 = vld [vmem:[#allocation7 + $0x28] sm:$0xff]   ;;  %v766_v12 = vld [vmem:[#allocation7 + $0x30] sm:$0xff]   ;;  %s509_s15 = sshll.u32 %s271_s30, 4  ;;  %s496_s13 = scalar_lea.sflag [#allocation4], %s1148_s29  ;;  %s1173_s15 = int_to_ptr.vmem [resolvable:$true] %s509_s15 }
  0x6e   : > { %657 = vmatprep.subr.bf16.mxu0 %v941_v0  ;;  %665 = vmatprep.subr.bf16.mxu1 %v941_v0  ;;  %v767_v13 = vld [vmem:[#allocation7 + $0x38] sm:$0xff]   ;;  %v614_v14 = vld [vmem:[%s1219_s2] ss:$0 sm:$0xff]  ;;  %s862_s17 = scalar_lea.vmem %s1173_s15, 128  ;;  %p1236_p0 = scmp.ne.s32.totalorder %s1231_s23, 0 }
  0x6f   : > { %v618_v24 = vld [vmem:[%s1221_s4] ss:$0 sm:$0xff]  ;;  %p863_p8 = scmp.ne.s32.totalorder %s1173_s15, %s862_s17  ;;  %s943_s22 = smov [#allocation8]  }
  0x70   : > { %s866_s7 = sshll.u32 %s943_s22, 4  ;;  %s867_s7 = int_to_ptr.vmem [resolvable:$false] %s866_s7 }
  0x71   : > { %658 = vmatpush3.bf16.msra.mxu0 %v759_v2  ;;  %666 = vmatpush3.bf16.msra.mxu1 %v761_v7  ;;  %p864_p1 = pnand %p863_p8, %p1236_p0  ;;  %s868_s6 = scalar_lea.vmem %s867_s7, 256 }
  0x72   : > { %667 = vmatprep.subr.bf16.mxu1 %v941_v0  ;;  %p869_p7 = scmp.lt.s32.totalorder %s1173_s15, %s867_s7  ;;  %p870_p9 = scmp.lt.s32.totalorder %s868_s6, %s862_s17 }
  0x73   : > { %p865_p3 = pneg %p864_p1 }
  0x74   : > { %660 = vmatmul.mubr.msk.bf16.vlgmr.msra.gmra.mrb[0].mxu0 %vm301_vm1, %v277_v6  ;;  %p871_p12 = por %p870_p9, %p869_p7 }
  0x75   : > { %668 = vmatpush3.bf16.msra.mxu1 %v762_v8 }
  0x76   : > { %669 = vmatprep.subr.bf16.mxu1 %v941_v0  ;;  %p872_p2 = pnand %p871_p12, %p865_p3 }
  0x79   : > { %670 = vmatpush3.bf16.msra.mxu1 %v763_v9 }
  0x7a   : > { %671 = vmatprep.subr.bf16.mxu1 %v941_v0 }
  0x7d   : > { %672 = vmatpush3.bf16.msra.mxu1 %v764_v10 }
  0x7e   : > { %673 = vmatprep.subr.bf16.mxu1 %v941_v0 }
  0x81   : > { %674 = vmatpush3.bf16.msra.mxu1 %v765_v11 }
  0x82   : > { %675 = vmatprep.subr.bf16.mxu1 %v941_v0 }
  0x85   : > { %676 = vmatpush3.bf16.msra.mxu1 %v766_v12 }
  0x86   : > { %677 = vmatprep.subr.bf16.mxu1 %v941_v0 }
  0x89   : > { %678 = vmatpush3.bf16.msra.mxu1 %v767_v13 }
 0x147   : > { %v339_v15 = vpop.f32.mrb[0].mxu0 }
 0x148   : > { %v340_v16 = vadd.f32 %v614_v14, %v339_v15  ;;  %v661_v17 = vpop.f32.mrb[1].mxu0 }
 0x149   : > { %v342_v18 = vpop.f32.mrb[2].mxu0 }
 0x14a   : > { %v343_v19 = vadd.f32 %v614_v14, %v342_v18  ;;  %v662_v20 = vpop.f32.mrb[3].mxu0  ;;  %v346_v21 = vmax.f32 %v340_v16, 0.0 }
 0x14c   : > { %v347_v22 = vmax.f32 %v343_v19, 0.0 }
 0x14e   : > { %v348_v23 = vpack.c.bf16 %v347_v22, %v346_v21 }
 0x150   : > { %680 = vmatmul.mubr.bf16.vlgmr.msra.gmra.mrb[0].mxu1 %v348_v23 }
 0x223   : > { %v454_v25 = vpop.f32.mrb[0].mxu1 }
 0x224   : > { %v455_v26 = vadd.f32 %v618_v24, %v454_v25  ;;  %v681_v27 = vpop.f32.mrb[1].mxu1 }
 0x225   : > { %v457_v28 = vpop.f32.mrb[2].mxu1 }
 0x226   : > { %461 = vmax.xlane.f32.xlu0 %v455_v26  ;;  %v682_v29 = vpop.f32.mrb[3].mxu1  ;;  %v458_v30 = vadd.f32 %v618_v24, %v457_v28 }
 0x22a   : > { %463 = vmax.xlane.f32.xlu0 %v458_v30 }
 0x2b3   : > { %v462_v31 = vpop.xlane.xlu0 %461 }
 0x2b4   : > { %v465_v32 = vsub.f32 %v455_v26, %v462_v31 }
 0x2b6   : > { %v467_v33 = vmul.f32 1.442695, %v465_v32 }
 0x2b7   : > { %v464_v34 = vpop.xlane.xlu0 %463 }
 0x2b8   : > { %768 = vpow2.f32 %v467_v33  ;;  %v466_v35 = vsub.f32 %v458_v30, %v464_v34 }
 0x2ba   : > { %v469_v36 = vmul.f32 1.442695, %v466_v35 }
 0x2bc   : > { %770 = vpow2.f32 %v469_v36 }
 0x2c2   : > { %v769_v37 = vpop.eup %768 }
 0x2c3   : > { %471 = vadd.xlane.f32.xlu1 %v769_v37 }
 0x2c6   : > { %v771_v38 = vpop.eup %770 }
 0x2c7   : > { %473 = vadd.xlane.f32.xlu1 %v771_v38 }
 0x350   : > { %v472_v39 = vpop.xlane.xlu1 %471 }
 0x351   : > { %772 = vrcp.f32 %v472_v39 }
 0x354   : > { %v474_v40 = vpop.xlane.xlu1 %473 }
 0x355   : > { %774 = vrcp.f32 %v474_v40 }
 0x35b   : > { %v773_v41 = vpop.eup %772 }
 0x35c   : > { %v477_v42 = vmul.f32 %v773_v41, %v472_v39 }
 0x35e   : > { %v479_v43 = vsub.f32 2.0, %v477_v42 }
 0x35f   : > { %v775_v44 = vpop.eup %774 }
 0x360   : > { %v478_v45 = vmul.f32 %v775_v44, %v474_v40  ;;  %v481_v46 = vmul.f32 %v773_v41, %v479_v43 }
 0x362   : > { %v480_v47 = vsub.f32 2.0, %v478_v45  ;;  %v483_v49 = vmul.f32 %v769_v37, %v481_v46 }
 0x364   : > { %v482_v48 = vmul.f32 %v775_v44, %v480_v47 }
 0x366   : > { %v484_v50 = vmul.f32 %v771_v38, %v482_v48 }
 0x368   : > { %v641_v51 = vpack.c.bf16 %v484_v50, %v483_v49 }
 0x36a   : > { %642 = vst [vmem:[%s271_s30] sm:$0xff] %v641_v51  }
 0x36b   : > { %875 = shalt.err (!%p872_p2)
}
 0x36c   : > { %s876_s24 = scalar_lea.hbm %s1171_s12, 128  ;;  %s880_s10 = scalar_lea.hbm %s1222_s5, 256 }
 0x36d   : > { %p877_p13 = scmp.ne.s32.totalorder %s1171_s12, %s876_s24  ;;  %p881_p4 = scmp.lt.u32.totalorder %s1171_s12, %s1222_s5 }
 0x36e   : > { %p882_p5 = scmp.lt.u32.totalorder %s880_s10, %s876_s24  ;;  %p884_p8 = scmp.lt.u32.totalorder %s876_s24, %s1171_s12 }
 0x36f   : > { %p878_p6 = pnand %p877_p13, %p1236_p0 }
 0x370   : > { %p883_p11 = por %p882_p5, %p881_p4 }
 0x371   : > { %p879_p10 = pneg %p878_p6 }
 0x372   : > { %p885_p1 = por %p884_p8, %p883_p11 }
 0x374   : > { %p886_p3 = pnand %p885_p1, %p879_p10 }
 0x376   : > { %889 = shalt.err (!%p886_p3)
}
 0x377   : > { %s944_s30 = smov 64   ;;  %s945_s16 = smov 4  }
 0x378   : > { %693 = dma.vmem_to_hbm [thread:$0]  (%p1236_p0), %s1173_s15, 128, %s1171_s12, %s496_s13, %s944_s30, %s944_s30, %s945_s16  }
 0x379 PF: > { %s524_s9 = sand.u32 1, %s920_s18   ;;  %p1237_p7 = scmp.ne.s32.totalorder %s1227_s25, 0 }
 0x37a   : > { %p1238_p9 = scmp.ge.s32.totalorder %s932_s21, 2  ;;  %s525_s17 = scalar_lea.sflag [#allocation4], %s524_s9 }
 0x37c   : > { %p707_p12 = pnand %p1238_p9, %p1237_p7 }
 0x37e   : > { %915 = dma.done.wait (!%p707_p12), %s525_s17, 128  }
 0x37f   : > { %917 = vsyncadd (!%p707_p12), %s525_s17, 4294967168  ;;  %p19_p2 = scmp.ge.s32.totalorder %s1086_s14, 4   ;;  %s1239_s18 = smov %s924_s19 }
 0x380   : > { %s1240_s19 = smov %s928_s20  ;;  %s1241_s20 = smov %s1102_s27 }
 0x381   : > { %s1242_s21 = smov %s1086_s14  ;;  %21 = sbr.rel (!%p19_p2) target bundleno = 6 (0x6), region = 93 }
 0x388   :  { %530 = vsyncpa [#allocation3], 1 }
 0x389   :  { %532 = vsyncpa [#allocation3 + $0x1], 1 }
 0x38a   :  { %533 = vsyncpa [#allocation6], 1 }
 0x38b   :  { %534 = vsyncpa [#allocation4], 1 }
 0x38c   :  { %536 = vsyncpa [#allocation4 + $0x1], 1 }

</bundles_post_ra>
